<compile_context>
chip_gen: v5e
topology: v5e:2x2
jax: 0.10.0
libtpu: 0.0.40
codegen_flags: <defaults>
</compile_context>

<pallas_src>
import functools
from typing import NamedTuple, Tuple

import jax
import jax.numpy as jnp
from jax import lax
from jax.experimental import pallas as pl
from jax.experimental.pallas import tpu as pltpu


class SparseCOO(NamedTuple):
    indices: jax.Array            # (ndim, nnz) int32
    values: jax.Array             # (nnz,) float
    dense_shape: Tuple[int, ...]  # static python tuple


_LANES = 128
_MAX_BLOCK_ROWS = 1024  # (1024,128) f32 block = 512 KiB; 2 bufs x (in+out) ~ 2 MiB VMEM


# ---------------------------------------------------------------------------
# Pallas kernel: dropout on one (block_rows, 128) tile of the values vector.
# ---------------------------------------------------------------------------
def _dropout_kernel(seed_ref, x_ref, o_ref, *, threshold: int, scale: float,
                    block_rows: int):
    shape = x_ref.shape
    row = lax.broadcasted_iota(jnp.uint32, shape, 0)
    col = lax.broadcasted_iota(jnp.uint32, shape, 1)
    base = (pl.program_id(0) * block_rows).astype(jnp.uint32)
    gidx = (base + row) * jnp.uint32(shape[1]) + col

    seed = seed_ref[0].astype(jnp.uint32)
    # murmur3-style finalizer over (seed, element index): bijective, well mixed.
    h = gidx ^ (seed * jnp.uint32(0x9E3779B9))
    h = h ^ (h >> jnp.uint32(16))
    h = h * jnp.uint32(0x85EBCA6B)
    h = h ^ (h >> jnp.uint32(13))
    h = h * jnp.uint32(0xC2B2AE35)
    h = h ^ (h >> jnp.uint32(16))

    keep = h >= jnp.uint32(threshold)            # P(keep) = 1 - p
    x = x_ref[...]
    # multiply in f32 (safe on v5e which has no bf16 VALU), store in native dtype
    scaled = (x.astype(jnp.float32) * jnp.float32(scale)).astype(o_ref.dtype)
    o_ref[...] = jnp.where(keep, scaled, jnp.zeros_like(scaled))


def _dropout_values(values: jax.Array, p: float, seed: int) -> jax.Array:
    """Apply dropout to a 1-D values vector via a Pallas TPU kernel."""
    nnz = values.shape[0]
    if nnz == 0:
        return values

    rem = nnz % _LANES
    if rem:
        # minimal lane padding only when nnz is not a multiple of 128
        x = jnp.concatenate([values, jnp.zeros((_LANES - rem,), values.dtype)])
    else:
        x = values
    rows = x.shape[0] // _LANES
    x2d = x.reshape(rows, _LANES)

    if rows <= _MAX_BLOCK_ROWS:
        block_rows = rows          # whole array in one block (full-dim block is legal)
        grid = (1,)
    else:
        block_rows = _MAX_BLOCK_ROWS
        grid = (pl.cdiv(rows, block_rows),)   # ragged last block handled by Pallas

    threshold = min(max(int(round(p * (1 << 32))), 0), (1 << 32) - 1)
    scale = 1.0 / (1.0 - p)
    seed_arr = jnp.asarray([seed], dtype=jnp.int32)

    out2d = pl.pallas_call(
        functools.partial(_dropout_kernel, threshold=threshold, scale=scale,
                          block_rows=block_rows),
        out_shape=jax.ShapeDtypeStruct(x2d.shape, values.dtype),
        grid_spec=pltpu.PrefetchScalarGridSpec(
            num_scalar_prefetch=1,
            grid=grid,
            in_specs=[pl.BlockSpec((block_rows, _LANES), lambda i, seed: (i, 0))],
            out_specs=pl.BlockSpec((block_rows, _LANES), lambda i, seed: (i, 0)),
        ),
        compiler_params=pltpu.CompilerParams(
            dimension_semantics=("parallel",),   # stateless RNG -> independent steps
        ),
    )(seed_arr, x2d)

    out = out2d.reshape(rows * _LANES)
    if rem:
        out = out[:nnz]
    return out


# ---------------------------------------------------------------------------
# Module wrapper mirroring SparseDropout.forward
# ---------------------------------------------------------------------------
class SparseDropout:
    def __init__(self, p: float):
        self.p = float(p)
        self.training = True

    def __call__(self, x: SparseCOO, seed: int = 0) -> SparseCOO:
        # TODO(synk): coalescing duplicate indices (sum-merge) is metadata
        # bookkeeping with no Pallas hot path; inputs here are pre-coalesced.
        if (not self.training) or self.p == 0.0:
            drop_val = x.values
        elif self.p >= 1.0:
            drop_val = jnp.zeros_like(x.values)
        else:
            drop_val = _dropout_values(x.values, self.p, seed)
        return SparseCOO(x.indices, drop_val, x.dense_shape)


if __name__ == "__main__":
    # Deterministic synthetic sparse tensor with dense shape (2, 4, 16, 16).
    dense_shape = (2, 4, 16, 16)
    nnz = 256
    key = jax.random.PRNGKey(0)
    k_idx, k_val = jax.random.split(key)

    # unique flat positions -> coalesced COO indices
    flat = jax.random.permutation(k_idx, 2 * 4 * 16 * 16)[:nnz]
    flat = jnp.sort(flat)
    unraveled = jnp.unravel_index(flat, dense_shape)
    indices = jnp.stack([u.astype(jnp.int32) for u in unraveled], axis=0)  # (4, nnz)
    values = jax.random.normal(k_val, (nnz,), dtype=jnp.float32)

    sp_in = SparseCOO(indices, values, dense_shape)

    layer = SparseDropout(p=0.5)
    layer.training = True
    sp_out = layer(sp_in, seed=1234)
    jax.block_until_ready(sp_out.values)

    # sanity checks: shape preserved, kept values scaled by 1/(1-p), rest zero
    assert sp_out.values.shape == (nnz,)
    assert sp_out.indices.shape == (4, nnz)
    kept = sp_out.values != 0.0
    n_kept = int(jnp.sum(kept))
    assert 0 < n_kept < nnz
    ratio = jnp.where(kept, sp_out.values / values, 2.0)
    assert bool(jnp.all(jnp.abs(ratio - 2.0) < 1e-4))

    # eval mode = identity
    layer.training = False
    sp_eval = layer(sp_in)
    jax.block_until_ready(sp_eval.values)
    assert bool(jnp.all(sp_eval.values == values))

    print("KERNEL_OK")
</pallas_src>

<mosaic_0001>
module attributes {stable_mosaic.version = 11 : i64} {
  func.func @_dropout_kernel(%arg0: i32, %arg1: memref<1xi32, #tpu.memory_space<smem>>, %arg2: memref<2x128xf32, #tpu.memory_space<vmem>>, %arg3: memref<2x128xf32, #tpu.memory_space<vmem>>) attributes {dimension_semantics = [#tpu.dimension_semantics<parallel>], iteration_bounds = array<i64: 1>, scalar_prefetch = 1 : i64, scratch_operands = 0 : i64, tpu.core_type = #tpu.core_type<tc>, window_params = [{transform_indices = @transform_0, window_bounds = array<i64: 2, 128>}, {transform_indices = @transform_1, window_bounds = array<i64: 2, 128>}]} {
    %0 = tpu.iota {dimensions = array<i32: 0>} : vector<2x128xi32>
    %1 = tpu.iota {dimensions = array<i32: 1>} : vector<2x128xi32>
    %c2_i32 = arith.constant 2 : i32
    %2 = arith.muli %arg0, %c2_i32 : i32
    %3 = vector.broadcast %2 : i32 to vector<2x128xi32>
    %4 = arith.addi %3, %0 : vector<2x128xi32>
    %c128_i32 = arith.constant 128 : i32
    %5 = vector.broadcast %c128_i32 : i32 to vector<2x128xi32>
    %6 = arith.muli %4, %5 : vector<2x128xi32>
    %7 = arith.addi %6, %1 : vector<2x128xi32>
    %c0 = arith.constant 0 : index
    %8 = memref.load %arg1[%c0] : memref<1xi32, #tpu.memory_space<smem>>
    %c-1640531527_i32 = arith.constant -1640531527 : i32
    %9 = arith.muli %8, %c-1640531527_i32 : i32
    %10 = vector.broadcast %9 : i32 to vector<2x128xi32>
    %11 = arith.xori %7, %10 : vector<2x128xi32>
    %c16_i32 = arith.constant 16 : i32
    %12 = vector.broadcast %c16_i32 : i32 to vector<2x128xi32>
    %13 = arith.shrui %11, %12 : vector<2x128xi32>
    %14 = arith.xori %11, %13 : vector<2x128xi32>
    %c-2048144789_i32 = arith.constant -2048144789 : i32
    %15 = vector.broadcast %c-2048144789_i32 : i32 to vector<2x128xi32>
    %16 = arith.muli %14, %15 : vector<2x128xi32>
    %c13_i32 = arith.constant 13 : i32
    %17 = vector.broadcast %c13_i32 : i32 to vector<2x128xi32>
    %18 = arith.shrui %16, %17 : vector<2x128xi32>
    %19 = arith.xori %16, %18 : vector<2x128xi32>
    %c-1028477387_i32 = arith.constant -1028477387 : i32
    %20 = vector.broadcast %c-1028477387_i32 : i32 to vector<2x128xi32>
    %21 = arith.muli %19, %20 : vector<2x128xi32>
    %c16_i32_0 = arith.constant 16 : i32
    %22 = vector.broadcast %c16_i32_0 : i32 to vector<2x128xi32>
    %23 = arith.shrui %21, %22 : vector<2x128xi32>
    %24 = arith.xori %21, %23 : vector<2x128xi32>
    %c-2147483648_i32 = arith.constant -2147483648 : i32
    %25 = vector.broadcast %c-2147483648_i32 : i32 to vector<2x128xi32>
    %26 = arith.cmpi uge, %24, %25 : vector<2x128xi32>
    %c0_1 = arith.constant 0 : index
    %c0_2 = arith.constant 0 : index
    %27 = vector.load %arg2[%c0_1, %c0_2] : memref<2x128xf32, #tpu.memory_space<vmem>>, vector<2x128xf32>
    %cst = arith.constant 2.000000e+00 : f32
    %28 = vector.broadcast %cst : f32 to vector<2x128xf32>
    %29 = arith.mulf %27, %28 : vector<2x128xf32>
    %cst_3 = arith.constant 0.000000e+00 : f32
    %30 = vector.broadcast %cst_3 : f32 to vector<2x128xf32>
    %31 = arith.select %26, %29, %30 : vector<2x128xi1>, vector<2x128xf32>
    %c0_4 = arith.constant 0 : index
    %c0_5 = arith.constant 0 : index
    %32 = vector.load %arg3[%c0_4, %c0_5] : memref<2x128xf32, #tpu.memory_space<vmem>>, vector<2x128xf32>
    tpu.vector_store %arg3[%c0_4, %c0_5], %31 {strides = array<i32>} : memref<2x128xf32, #tpu.memory_space<vmem>>, vector<2x128xf32>,
    return
  }
  func.func @transform_0(%arg0: i32, %arg1: memref<1xi32, #tpu.memory_space<smem>>) -> (i32, i32) {
    %c0_i32 = arith.constant 0 : i32
    %c0_i32_0 = arith.constant 0 : i32
    return %arg0, %c0_i32 : i32, i32
  }
  func.func @transform_1(%arg0: i32, %arg1: memref<1xi32, #tpu.memory_space<smem>>) -> (i32, i32) {
    %c0_i32 = arith.constant 0 : i32
    %c0_i32_0 = arith.constant 0 : i32
    return %arg0, %c0_i32 : i32, i32
  }
}

</mosaic_0001>

<bundles_post_ra>
// kernel: tpu_custom_call.1
= control target key start
LH: loop header
LB: loop body
LE: loop exit
PB: predicated region body
PF: predicated region fallthrough
CT: control target
= control target key end

     0   :  { %v11_v0 = vlaneseq  ;;  %s108_s0 = inlined_call_operand.<no memory space> [shape: s32[1], index: 0, kind: input, shape index: {}]   ;;  %s109_s1 = inlined_call_operand.vmem [shape: f32[2,128], index: 1, kind: input, shape index: {}]   ;;  %s110_s2 = inlined_call_operand.hbm [shape: f32[2,128], index: 2, kind: output, shape index: {}]  }
   0x1   :  { %8 = vsyncpa [#allocation5], 0  ;;  %s21_s11 = smul.u32 2654435769, %s108_s0  ;;  %v35_v14 = vld [vmem:[%s109_s1] sm:$0x3] }
   0x2   :  { %v12_v1 = vshrl.u32 %v11_v0, 7  ;;  %v14_v2 = vand.u32 127, %v11_v0  ;;  %v36_v16 = vmul.f32 2.0, %v35_v14  ;;  %s83_s0 = smov [#allocation4]   ;;  %s46_s17 = sshll.u32 %s110_s2, 4  ;;  %s47_s17 = int_to_ptr.hbm [resolvable:$true] %s46_s17 }
   0x3   :  { %v22_v4 = vstv %s21_s11  ;;  %s44_s14 = sshll.u32 %s83_s0, 4  ;;  %s45_s14 = int_to_ptr.vmem [resolvable:$true] %s44_s14 }
   0x4   :  { %v18_v3 = vmul.u32 128, %v12_v1 }
   0x6   :  { %v19_v5 = vadd.s32 %v18_v3, %v14_v2 }
   0x8   :  { %v23_v6 = vxor.u32 %v22_v4, %v19_v5 }
   0xa   :  { %v24_v7 = vshrl.u32 %v23_v6, 16 }
   0xc   :  { %v25_v8 = vxor.u32 %v24_v7, %v23_v6 }
   0xe   :  { %v26_v9 = vmul.u32 2246822507, %v25_v8 }
  0x10   :  { %v27_v10 = vshrl.u32 %v26_v9, 13 }
  0x12   :  { %v28_v11 = vxor.u32 %v27_v10, %v26_v9 }
  0x14   :  { %v29_v12 = vmul.u32 3266489909, %v28_v11 }
  0x16   :  { %v30_v13 = vshrl.u32 %v29_v12, 16 }
  0x18   :  { %v31_v15 = vxor.u32 %v30_v13, %v29_v12 }
  0x1a   :  { %v55_v17 = vxor.u32 2147483648, %v31_v15 }
  0x1c   :  { %vm34_vm0 = vcmp.ge.s32.totalorder %v55_v17, 0 }
  0x1d   :  { %v37_v18 = vsel %vm34_vm0, %v36_v16, 0.0 }
  0x1e   :  { %38 = vst [vmem:[#allocation4] sm:$0x3] %v37_v18 }
  0x1f   :  { %49 = dma.vmem_to_hbm [thread:$0]  %s45_s14, 32, %s47_s17, [#allocation5]  }
  0x20   :  { %81 = dma.done.wait [#allocation5], 32  }
  0x21   :  { %82 = vsyncadd [#allocation5], 4294967264 }
  0x22   :  { %54 = vsyncpa [#allocation5], 1 }

</bundles_post_ra>
